<compile_context>
chip_gen: v6e
topology: v6e:2x2x1
jax: 0.10.0
libtpu: 0.0.40
codegen_flags: <defaults>
</compile_context>

<pallas_src>
import functools

import jax
import jax.numpy as jnp
from jax import lax
from jax.experimental import pallas as pl
from jax.experimental.pallas import tpu as pltpu

_LANE = 128


def _round_up(x: int, m: int) -> int:
    return ((x + m - 1) // m) * m


def _cdiv(a: int, b: int) -> int:
    return -(-a // b)


@functools.lru_cache(maxsize=None)
def _vmem_capacity_bytes() -> int:
    try:
        return int(pltpu.get_tpu_info().vmem_capacity_bytes)
    except Exception:
        return 64 << 20  # conservative (v7x-sized) fallback


# --------------------------------------------------------------------------- #
# Kernels
# --------------------------------------------------------------------------- #
def _linear_relu_fused_kernel(x_ref, w_ref, b_ref, o_ref):
    """relu(x @ w.T + b) for one (i, j) output tile; K fully resident in VMEM.

    x_ref: [tm, K_p]   activations tile
    w_ref: [tn, K_p]   weight tile in PyTorch [Out, In] layout (no transpose)
    b_ref: [1,  tn]    bias tile (float32)
    o_ref: [tm, tn]    output tile
    """
    acc = lax.dot_general(
        x_ref[...],
        w_ref[...],
        dimension_numbers=(((1,), (1,)), ((), ())),
        preferred_element_type=jnp.float32,
    )
    o_ref[...] = jnp.maximum(acc + b_ref[...], 0.0).astype(o_ref.dtype)


def _linear_relu_acc_kernel(x_ref, w_ref, b_ref, o_ref, acc_ref):
    """K-tiled fallback: one (i, j, k) grid step of relu(x @ w.T + b)."""
    k = pl.program_id(2)

    @pl.when(k == 0)
    def _init():
        acc_ref[...] = jnp.zeros_like(acc_ref)

    acc_ref[...] += lax.dot_general(
        x_ref[...],
        w_ref[...],
        dimension_numbers=(((1,), (1,)), ((), ())),
        preferred_element_type=jnp.float32,
    )

    @pl.when(k == pl.num_programs(2) - 1)
    def _finalize():
        o_ref[...] = jnp.maximum(acc_ref[...] + b_ref[...], 0.0).astype(o_ref.dtype)


# --------------------------------------------------------------------------- #
# Tile selection
# --------------------------------------------------------------------------- #
def _choose_tiles(B, In, Out, in_itemsize, out_itemsize, sublane, budget,
                  force_k_split):
    b_rounded = _round_up(B, sublane)
    out_rounded = _round_up(Out, _LANE)
    in_rounded = _round_up(In, _LANE)

    # Balanced splits: divide into the fewest near-equal tiles under a cap, so
    # padding waste stays below one (small) tile instead of up to a full 512.
    tm_cap = 1024 if budget >= (48 << 20) else 512
    tn_cap = 512
    n_m = _cdiv(b_rounded, tm_cap)
    tile_m = _round_up(_cdiv(b_rounded, n_m), sublane)
    n_n = _cdiv(out_rounded, tn_cap)
    tile_n = _round_up(_cdiv(out_rounded, n_n), _LANE)

    # Megacore (v7x has 2 TensorCores): guarantee >=2 blocks along a
    # "parallel" grid axis whenever the problem allows it.
    if _cdiv(b_rounded, tile_m) * _cdiv(out_rounded, tile_n) == 1:
        if tile_n >= 2 * _LANE:
            tile_n = _round_up(_cdiv(tile_n, 2), _LANE)
        elif tile_m >= 2 * sublane:
            tile_m = _round_up(_cdiv(tile_m, 2), sublane)

    def _bytes(tm, tn, tk, with_acc):
        x_b = tm * tk * in_itemsize
        w_b = tn * tk * in_itemsize
        o_b = tm * tn * out_itemsize
        b_b = tn * 4
        total = 2 * (x_b + w_b + o_b + b_b)  # double-buffered by the pipeline
        if with_acc:
            total += tm * tn * 4             # f32 accumulator scratch
        return total

    fuse_k = (not force_k_split) and _bytes(tile_m, tile_n, in_rounded, False) <= budget
    if fuse_k:
        tile_k = in_rounded
    else:
        tile_k = in_rounded
        for cand in (2048, 1024, 512, 256, 128):
            if cand >= in_rounded:
                continue
            n_k = _cdiv(in_rounded, cand)
            tile_k = _round_up(_cdiv(in_rounded, n_k), _LANE)
            if _bytes(tile_m, tile_n, tile_k, True) <= budget:
                break
        while _bytes(tile_m, tile_n, tile_k, True) > budget and tile_n > _LANE:
            tile_n = _round_up(_cdiv(tile_n, 2), _LANE)
        while _bytes(tile_m, tile_n, tile_k, True) > budget and tile_m > sublane:
            tile_m = _round_up(_cdiv(tile_m, 2), sublane)

    return tile_m, tile_n, tile_k, fuse_k


# --------------------------------------------------------------------------- #
# Public wrapper
# --------------------------------------------------------------------------- #
@functools.partial(jax.jit, static_argnames=("cast_to_bf16", "force_k_split"))
def feature_extractor(x, weight, bias, *, cast_to_bf16: bool = False,
                      force_k_split: bool = False):
    """relu(x @ weight.T + bias).

    x:      [B, In]
    weight: [Out, In]  (PyTorch nn.Linear convention — NOT pre-transposed)
    bias:   [Out]      (kept in float32 throughout)
    returns [B, Out] in x's original dtype.

    Recommendation: for non-trivial In/Out use cast_to_bf16=True (bf16
    operands, f32 MXU accumulation, f32 bias+ReLU epilogue) — halves HBM
    traffic and doubles MXU throughput with negligible accuracy impact.
    `force_k_split` exists only to exercise the K-tiled fallback in tests.
    """
    B, In = x.shape
    Out, In_w = weight.shape
    assert In_w == In, "weight must be [Out, In]"
    out_dtype = x.dtype

    if cast_to_bf16:
        x = x.astype(jnp.bfloat16)
        weight = weight.astype(jnp.bfloat16)

    sublane = 16 if x.dtype == jnp.bfloat16 else 8
    in_itemsize = jnp.dtype(x.dtype).itemsize
    out_itemsize = jnp.dtype(out_dtype).itemsize

    physical = _vmem_capacity_bytes()
    budget = min(physical // 2, 64 << 20)          # ~32 MiB v7x, ~64 MiB v5e/v6e
    vmem_limit = int(min(physical - (8 << 20), budget + (16 << 20)))

    tile_m, tile_n, tile_k, fuse_k = _choose_tiles(
        B, In, Out, in_itemsize, out_itemsize, sublane, budget, force_k_split)

    B_p = _round_up(B, tile_m)
    In_p = _round_up(In, tile_k)
    Out_p = _round_up(Out, tile_n)

    # Zero-pad only when needed: each standalone pad/slice is a full HBM pass.
    x_p = x if (B_p, In_p) == (B, In) else jnp.pad(x, ((0, B_p - B), (0, In_p - In)))
    w_p = weight if (Out_p, In_p) == (Out, In) else jnp.pad(
        weight, ((0, Out_p - Out), (0, In_p - In)))
    b2 = bias.reshape(1, Out).astype(jnp.float32)   # bias stays f32 end-to-end
    b_p = b2 if Out_p == Out else jnp.pad(b2, ((0, 0), (0, Out_p - Out)))

    compiler_params = pltpu.CompilerParams(
        dimension_semantics=(("parallel", "parallel") if fuse_k
                             else ("parallel", "parallel", "arbitrary")),
        vmem_limit_bytes=vmem_limit,
    )

    if fuse_k:
        out_padded = pl.pallas_call(
            _linear_relu_fused_kernel,
            out_shape=jax.ShapeDtypeStruct((B_p, Out_p), out_dtype),
            grid_spec=pltpu.PrefetchScalarGridSpec(
                num_scalar_prefetch=0,
                grid=(B_p // tile_m, Out_p // tile_n),
                in_specs=[
                    pl.BlockSpec((tile_m, In_p), lambda i, j: (i, 0)),   # x
                    pl.BlockSpec((tile_n, In_p), lambda i, j: (j, 0)),   # weight
                    pl.BlockSpec((1, tile_n), lambda i, j: (0, j)),      # bias f32
                ],
                out_specs=pl.BlockSpec((tile_m, tile_n), lambda i, j: (i, j)),
            ),
            compiler_params=compiler_params,
        )(x_p, w_p, b_p)
    else:
        out_padded = pl.pallas_call(
            _linear_relu_acc_kernel,
            out_shape=jax.ShapeDtypeStruct((B_p, Out_p), out_dtype),
            grid_spec=pltpu.PrefetchScalarGridSpec(
                num_scalar_prefetch=0,
                grid=(B_p // tile_m, Out_p // tile_n, In_p // tile_k),
                in_specs=[
                    pl.BlockSpec((tile_m, tile_k), lambda i, j, k: (i, k)),  # x
                    pl.BlockSpec((tile_n, tile_k), lambda i, j, k: (j, k)),  # weight
                    pl.BlockSpec((1, tile_n), lambda i, j, k: (0, j)),       # bias f32
                ],
                out_specs=pl.BlockSpec((tile_m, tile_n), lambda i, j, k: (i, j)),
                scratch_shapes=[pltpu.VMEM((tile_m, tile_n), jnp.float32)],
            ),
            compiler_params=compiler_params,
        )(x_p, w_p, b_p)

    if (B_p, Out_p) != (B, Out):
        out_padded = out_padded[:B, :Out]
    return out_padded


if __name__ == "__main__":
    # Small shapes consistent with the module: x is [batch, input_size].
    batch, input_size, output_size = 8, 32, 16

    key = jax.random.PRNGKey(0)
    kx, kw, kb = jax.random.split(key, 3)

    x = jax.random.normal(kx, (batch, input_size), dtype=jnp.float32)
    # PyTorch nn.Linear default init: U(-k, k), k = 1/sqrt(in_features).
    bound = 1.0 / jnp.sqrt(jnp.float32(input_size))
    weight = jax.random.uniform(
        kw, (output_size, input_size), dtype=jnp.float32, minval=-bound, maxval=bound
    )
    bias = jax.random.uniform(
        kb, (output_size,), dtype=jnp.float32, minval=-bound, maxval=bound
    )

    ref = jnp.maximum(x @ weight.T + bias, 0.0)

    # 1) f32, fused-K path at the module's toy shape.
    out = jax.block_until_ready(feature_extractor(x, weight, bias))
    assert out.shape == (batch, output_size)
    assert jnp.allclose(out, ref, atol=1e-5, rtol=1e-5)

    # 2) batch not a multiple of the sublane width — padded rows must not leak.
    x_odd = jax.random.normal(kx, (10, input_size), dtype=jnp.float32)
    ref_odd = jnp.maximum(x_odd @ weight.T + bias, 0.0)
    out_odd = jax.block_until_ready(feature_extractor(x_odd, weight, bias))
    assert out_odd.shape == (10, output_size)
    assert jnp.allclose(out_odd, ref_odd, atol=1e-5, rtol=1e-5)

    # 3) bf16 operands with f32 accumulation (the recommended real-size config).
    out_bf16 = jax.block_until_ready(
        feature_extractor(x, weight, bias, cast_to_bf16=True)
    )
    assert out_bf16.shape == (batch, output_size)
    assert jnp.allclose(out_bf16, ref, atol=3e-2, rtol=3e-2)

    # 4) K-tiled accumulator fallback path (forced; normally only for huge In).
    in_big = 256
    kx2, kw2 = jax.random.split(kx)
    x_big = jax.random.normal(kx2, (batch, in_big), dtype=jnp.float32)
    w_big = jax.random.uniform(
        kw2, (output_size, in_big), dtype=jnp.float32,
        minval=-1.0 / jnp.sqrt(jnp.float32(in_big)),
        maxval=1.0 / jnp.sqrt(jnp.float32(in_big)),
    )
    ref_big = jnp.maximum(x_big @ w_big.T + bias, 0.0)
    out_big = jax.block_until_ready(
        feature_extractor(x_big, w_big, bias, force_k_split=True)
    )
    assert out_big.shape == (batch, output_size)
    assert jnp.allclose(out_big, ref_big, atol=1e-5, rtol=1e-5)

    print("KERNEL_OK")
</pallas_src>

<mosaic_0001>
module attributes {stable_mosaic.version = 11 : i64} {
  func.func @_linear_relu_fused_kernel(%arg0: i32, %arg1: i32, %arg2: memref<8x128xf32, #tpu.memory_space<vmem>>, %arg3: memref<128x128xf32, #tpu.memory_space<vmem>>, %arg4: memref<1x128xf32, #tpu.memory_space<vmem>>, %arg5: memref<8x128xf32, #tpu.memory_space<vmem>>) attributes {dimension_semantics = [#tpu.dimension_semantics<parallel>, #tpu.dimension_semantics<parallel>], iteration_bounds = array<i64: 1, 1>, scalar_prefetch = 0 : i64, scratch_operands = 0 : i64, tpu.core_type = #tpu.core_type<tc>, window_params = [{transform_indices = @transform_0, window_bounds = array<i64: 8, 128>}, {transform_indices = @transform_1, window_bounds = array<i64: 128, 128>}, {transform_indices = @transform_2, window_bounds = array<i64: 1, 128>}, {transform_indices = @transform_3, window_bounds = array<i64: 8, 128>}]} {
    %c0 = arith.constant 0 : index
    %c0_0 = arith.constant 0 : index
    %0 = vector.load %arg2[%c0, %c0_0] : memref<8x128xf32, #tpu.memory_space<vmem>>, vector<8x128xf32>
    %c0_1 = arith.constant 0 : index
    %c0_2 = arith.constant 0 : index
    %1 = vector.load %arg3[%c0_1, %c0_2] : memref<128x128xf32, #tpu.memory_space<vmem>>, vector<128x128xf32>
    %cst = arith.constant dense<0.000000e+00> : vector<8x128xf32>
    %2 = tpu.matmul %0, %1, %cst {dimension_numbers = #tpu.dot_dimension_numbers<[1], [1], [0], [0], [0, 0, 1, 0], [], []>} : vector<8x128xf32>, vector<128x128xf32>, vector<8x128xf32> -> vector<8x128xf32>
    %c0_3 = arith.constant 0 : index
    %c0_4 = arith.constant 0 : index
    %3 = vector.load %arg4[%c0_3, %c0_4] : memref<1x128xf32, #tpu.memory_space<vmem>>, vector<1x128xf32>
    %4 = vector.broadcast %3 : vector<1x128xf32> to vector<8x128xf32>
    %5 = arith.addf %2, %4 : vector<8x128xf32>
    %cst_5 = arith.constant 0.000000e+00 : f32
    %6 = vector.broadcast %cst_5 : f32 to vector<8x128xf32>
    %7 = arith.maximumf %5, %6 : vector<8x128xf32>
    %c0_6 = arith.constant 0 : index
    %c0_7 = arith.constant 0 : index
    %8 = vector.load %arg5[%c0_6, %c0_7] : memref<8x128xf32, #tpu.memory_space<vmem>>, vector<8x128xf32>
    tpu.vector_store %arg5[%c0_6, %c0_7], %7 {strides = array<i32>} : memref<8x128xf32, #tpu.memory_space<vmem>>, vector<8x128xf32>,
    return
  }
  func.func @transform_0(%arg0: i32, %arg1: i32) -> (i32, i32) {
    %c0_i32 = arith.constant 0 : i32
    %c0_i32_0 = arith.constant 0 : i32
    return %arg0, %c0_i32 : i32, i32
  }
  func.func @transform_1(%arg0: i32, %arg1: i32) -> (i32, i32) {
    %c0_i32 = arith.constant 0 : i32
    %c0_i32_0 = arith.constant 0 : i32
    return %arg1, %c0_i32 : i32, i32
  }
  func.func @transform_2(%arg0: i32, %arg1: i32) -> (i32, i32) {
    %c0_i32 = arith.constant 0 : i32
    %c0_i32_0 = arith.constant 0 : i32
    return %c0_i32, %arg1 : i32, i32
  }
  func.func @transform_3(%arg0: i32, %arg1: i32) -> (i32, i32) {
    %c0_i32 = arith.constant 0 : i32
    return %arg0, %arg1 : i32, i32
  }
}

</mosaic_0001>

<bundles_post_ra>
// kernel: feature_extractor.1
= control target key start
LH: loop header
LB: loop body
LE: loop exit
PB: predicated region body
PF: predicated region fallthrough
CT: control target
= control target key end

     0   :  { %v203_v1 = vmov 0.0   ;;  %vm204_vm0 = vmmov 0   ;;  %s283_s0 = inlined_call_operand.vmem [shape: f32[8,128], index: 0, kind: input, shape index: {}]   ;;  %s284_s1 = inlined_call_operand.vmem [shape: f32[128,128], index: 1, kind: input, shape index: {}]   ;;  %s285_s2 = inlined_call_operand.vmem [shape: f32[1,128], index: 2, kind: input, shape index: {}]   ;;  %s286_s3 = inlined_call_operand.hbm [shape: f32[8,128], index: 3, kind: output, shape index: {}]  }
   0x1   :  { %v31_v0 = vld [vmem:[%s284_s1 + $0x78] sm:$0xff]  ;;  %143 = vmatprep.subr.mxu0 %v203_v1  ;;  %175 = vmatprep.mubr.msk.f32.mxu0 %vm204_vm0, %v203_v1  ;;  %v30_v2 = vld [vmem:[%s284_s1 + $0x70] sm:$0xff] }
   0x2   :  { %144 = vmatpush3.xpose.msra.mxu0 %v31_v0 }
   0x3   :  { %145 = vmatprep.subr.mxu0 %v203_v1 }
   0x6   :  { %146 = vmatpush3.xpose.msra.mxu0 %v30_v2 }
   0x7   :  { %8 = vsyncpa [#allocation3], 0  ;;  %147 = vmatprep.subr.mxu0 %v203_v1  ;;  %v29_v3 = vld [vmem:[%s284_s1 + $0x68] sm:$0xff]  ;;  %v28_v4 = vld [vmem:[%s284_s1 + $0x60] sm:$0xff]  ;;  %s205_s21 = smov [#allocation2]  }
   0x8   :  { %v27_v5 = vld [vmem:[%s284_s1 + $0x58] sm:$0xff]  ;;  %v26_v6 = vld [vmem:[%s284_s1 + $0x50] sm:$0xff]  ;;  %v25_v7 = vld [vmem:[%s284_s1 + $0x48] sm:$0xff]  ;;  %s117_s22 = sshll.u32 %s205_s21, 4  ;;  %s118_s22 = int_to_ptr.vmem [resolvable:$true] %s117_s22 }
   0x9   :  { %v24_v8 = vld [vmem:[%s284_s1 + $0x40] sm:$0xff]  ;;  %v23_v9 = vld [vmem:[%s284_s1 + $0x38] sm:$0xff]  ;;  %v22_v10 = vld [vmem:[%s284_s1 + $0x30] sm:$0xff]  ;;  %s181_s23 = scalar_lea.vmem %s118_s22, 128  ;;  %p186_p1 = scmp.lt.s32.totalorder %s118_s22, %s118_s22 }
   0xa   :  { %148 = vmatpush3.xpose.msra.mxu0 %v29_v3  ;;  %v21_v11 = vld [vmem:[%s284_s1 + $0x28] sm:$0xff]  ;;  %v20_v12 = vld [vmem:[%s284_s1 + $0x20] sm:$0xff]  ;;  %v19_v13 = vld [vmem:[%s284_s1 + $0x18] sm:$0xff]  ;;  %p182_p0 = scmp.ne.s32.totalorder %s118_s22, %s181_s23  ;;  %p187_p2 = scmp.lt.s32.totalorder %s181_s23, %s181_s23 }
   0xb   :  { %149 = vmatprep.subr.mxu0 %v203_v1  ;;  %v18_v14 = vld [vmem:[%s284_s1 + $0x10] sm:$0xff]  ;;  %v17_v15 = vld [vmem:[%s284_s1 + $0x8] sm:$0xff]  ;;  %v16_v16 = vld [vmem:[%s284_s1] sm:$0xff] }
   0xc   :  { %v15_v17 = vld [vmem:[%s283_s0] sm:$0xff]  ;;  %p188_p3 = por %p187_p2, %p186_p1 }
   0xd   :  { %v125_v18 = vld [vmem:[%s285_s2] ss:$0 sm:$0xff] }
   0xe   :  { %150 = vmatpush3.xpose.msra.mxu0 %v28_v4  ;;  %p189_p4 = pnand %p188_p3, %p182_p0 }
   0xf   :  { %151 = vmatprep.subr.mxu0 %v203_v1 }
  0x12   :  { %152 = vmatpush3.xpose.msra.mxu0 %v27_v5 }
  0x13   :  { %153 = vmatprep.subr.mxu0 %v203_v1 }
  0x16   :  { %154 = vmatpush3.xpose.msra.mxu0 %v26_v6 }
  0x17   :  { %155 = vmatprep.subr.mxu0 %v203_v1 }
  0x1a   :  { %156 = vmatpush3.xpose.msra.mxu0 %v25_v7 }
  0x1b   :  { %157 = vmatprep.subr.mxu0 %v203_v1 }
  0x1e   :  { %158 = vmatpush3.xpose.msra.mxu0 %v24_v8 }
  0x1f   :  { %159 = vmatprep.subr.mxu0 %v203_v1 }
  0x22   :  { %160 = vmatpush3.xpose.msra.mxu0 %v23_v9 }
  0x23   :  { %161 = vmatprep.subr.mxu0 %v203_v1 }
  0x26   :  { %162 = vmatpush3.xpose.msra.mxu0 %v22_v10 }
  0x27   :  { %163 = vmatprep.subr.mxu0 %v203_v1 }
  0x2a   :  { %164 = vmatpush3.xpose.msra.mxu0 %v21_v11 }
  0x2b   :  { %165 = vmatprep.subr.mxu0 %v203_v1 }
  0x2e   :  { %166 = vmatpush3.xpose.msra.mxu0 %v20_v12 }
  0x2f   :  { %167 = vmatprep.subr.mxu0 %v203_v1 }
  0x32   :  { %168 = vmatpush3.xpose.msra.mxu0 %v19_v13 }
  0x33   :  { %169 = vmatprep.subr.mxu0 %v203_v1 }
  0x36   :  { %170 = vmatpush3.xpose.msra.mxu0 %v18_v14 }
  0x37   :  { %171 = vmatprep.subr.mxu0 %v203_v1 }
  0x3a   :  { %172 = vmatpush3.xpose.msra.mxu0 %v17_v15 }
  0x3b   :  { %173 = vmatprep.subr.mxu0 %v203_v1 }
  0x3e   :  { %174 = vmatpush3.xpose.msra.mxu0 %v16_v16 }
  0x41   :  { %176 = vmatmul.mubr.f32.vlgmr.msra.gmra.mxu0 %v15_v17 }
 0x101   :  { %v105_v19 = vpop.f32.mrf.mxu0 }
 0x102   :  { %v106_v20 = vadd.f32 %v125_v18, %v105_v19 }
 0x103   :  { %v177_v21 = vpop.f32.mrf.mxu0 }
 0x104   :  { %v109_v22 = vmax.f32 %v106_v20, 0.0 }
 0x106   :  { %110 = vst [vmem:[#allocation2] sm:$0xff] %v109_v22 }
 0x107   :  { %192 = shalt.err (!%p189_p4)
}
 0x108   :  { %120 = dma.vmem_to_hbm [thread:$0]  %s118_s22, 128, %s286_s3, [#allocation3]  }
 0x109   :  { %201 = dma.done.wait [#allocation3], 128  }
 0x10a   :  { %202 = vsyncadd [#allocation3], 4294967168 }
 0x10b   :  { %124 = vsyncpa [#allocation3], 1 }

</bundles_post_ra>
